<compile_context>
chip_gen: v7x
topology: tpu7x:2x2x1
jax: 0.10.0
libtpu: 0.0.40
codegen_flags: <defaults>
</compile_context>

<pallas_src>
import functools

import jax
import jax.numpy as jnp
from jax.experimental import pallas as pl
from jax.experimental.pallas import tpu as pltpu


def _round_up(x, m):
    return ((x + m - 1) // m) * m


def _device_kind():
    try:
        return jax.devices()[0].device_kind.lower()
    except Exception:
        return ""


def _mlp_kernel(x_ref, w1_ref, b1_ref, w2_ref, b2_ref, o_ref, *, use_bf16):
    # x_ref:  (in_f, TB)      feature-major batch tile (f32 or bf16-streamed)
    # w1_ref: (hidden, in_f)  f32 (PyTorch layout: out_features x in_features)
    # b1_ref: (hidden, 1)     f32
    # w2_ref: (out_f, hidden) f32
    # b2_ref: (out_f, 1)      f32
    # o_ref:  (out_f, TB)     f32, lane-dense
    x = x_ref[...]
    in_f = x.shape[0]

    if use_bf16:
        xc = x.astype(jnp.bfloat16)
        w1c = w1_ref[...].astype(jnp.bfloat16)
    else:
        xc = x.astype(jnp.float32)
        w1c = w1_ref[...]

    # Layer 1: K=4 contraction as broadcast multiply-accumulate on the VPU
    # (an MXU matmul would be <2% utilized at K=4).  Accumulation stays f32.
    h = b1_ref[...]
    for k in range(in_f):  # static unroll, in_f = 4
        h = h + (w1c[:, k : k + 1] * xc[k : k + 1, :]).astype(jnp.float32)
    h = jnp.maximum(h, 0.0)  # ReLU, (hidden, TB) f32

    # Layer 2: (out_f, hidden) @ (hidden, TB) on the MXU, f32 accumulation.
    if use_bf16:
        out = jnp.dot(
            w2_ref[...].astype(jnp.bfloat16),
            h.astype(jnp.bfloat16),
            preferred_element_type=jnp.float32,
        )
    else:
        out = jnp.dot(w2_ref[...], h, preferred_element_type=jnp.float32)
    o_ref[...] = (out + b2_ref[...]).astype(o_ref.dtype)


def ann_forward_fm(x_fm, w1, b1, w2, b2, *, block_b=8192, input_dtype=None, use_bf16=None):
    """Feature-major fast path (no host-side transposes).

    x_fm: (4, B)  float32 (features on sublanes, batch on lanes)
    w1:   (64, 4) float32   b1: (64,)
    w2:   (3, 64) float32   b2: (3,)
    returns logits (3, B) float32
    """
    in_f, B = x_fm.shape
    hidden = w1.shape[0]
    out_f = w2.shape[0]

    kind = _device_kind()
    if use_bf16 is None:
        # bf16 VALU math only pays off on v6e/v7x; keep f32 on older generations.
        use_bf16 = not any(v in kind for v in ("v2", "v3", "v4", "v5"))

    if input_dtype is not None:
        x_fm = x_fm.astype(input_dtype)  # e.g. bf16 streaming; compute stays f32/f32-acc

    # Tile size: multiple of 128 (lane-dense, unmasked stores), large enough to amortize
    # the fixed per-grid-step pipeline overhead.
    tb = max(128, (min(block_b, _round_up(B, 128)) // 128) * 128)
    n_tiles = -(-B // tb)
    if n_tiles > 1 and n_tiles % 2 == 1 and "v7" in kind:
        n_tiles += 1  # even grid balances the two v7x TensorCores on the "parallel" axis
    bp = n_tiles * tb

    if bp != B:
        # Zero-padded batch columns: garbage results are sliced off before return.
        x_fm = jnp.pad(x_fm, ((0, 0), (0, bp - B)))

    w1_f = jnp.asarray(w1, jnp.float32)
    w2_f = jnp.asarray(w2, jnp.float32)
    b1_c = jnp.asarray(b1, jnp.float32).reshape(hidden, 1)
    b2_c = jnp.asarray(b2, jnp.float32).reshape(out_f, 1)

    # Scale the scoped-VMEM limit with the tile (h temp + double-buffered x/out tiles),
    # clamped so it is safe on every generation (v7x has only 64 MiB physical per TC).
    vmem_limit = int(min(48 << 20, max(32 << 20, 768 * tb)))

    x_bytes = jnp.dtype(x_fm.dtype).itemsize

    out_fm = pl.pallas_call(
        functools.partial(_mlp_kernel, use_bf16=use_bf16),
        out_shape=jax.ShapeDtypeStruct((out_f, bp), jnp.float32),
        grid=(n_tiles,),
        in_specs=[
            pl.BlockSpec((in_f, tb), lambda i: (0, i)),      # x tile walks the batch
            pl.BlockSpec((hidden, in_f), lambda i: (0, 0)),  # weights/biases stay resident
            pl.BlockSpec((hidden, 1), lambda i: (0, 0)),
            pl.BlockSpec((out_f, hidden), lambda i: (0, 0)),
            pl.BlockSpec((out_f, 1), lambda i: (0, 0)),
        ],
        out_specs=pl.BlockSpec((out_f, tb), lambda i: (0, i)),
        compiler_params=pltpu.CompilerParams(
            dimension_semantics=("parallel",),
            vmem_limit_bytes=vmem_limit,
        ),
        cost_estimate=pl.CostEstimate(
            flops=int(2 * bp * (in_f * hidden + hidden * out_f)),
            transcendentals=0,
            bytes_accessed=int(
                bp * (in_f * x_bytes + out_f * 4)
                + 4 * (w1_f.size + b1_c.size + w2_f.size + b2_c.size)
            ),
        ),
    )(x_fm, w1_f, b1_c, w2_f, b2_c)

    return out_fm[:, :B]


def ann_forward(x, w1, b1, w2, b2, **kwargs):
    """PyTorch-layout compatibility wrapper: x (B, 4) -> logits (B, 3).

    Prefer `ann_forward_fm` (feature-major end-to-end) in performance-critical code:
    this wrapper adds one transpose pass on each side of the kernel.
    """
    return ann_forward_fm(x.T, w1, b1, w2, b2, **kwargs).T


def init_params(key, in_features=4, hidden=64, out_features=3):
    """Deterministic init matching nn.Linear's default U(-1/sqrt(fan_in), 1/sqrt(fan_in)).

    Weights are kept in PyTorch layout (out_features, in_features)."""
    k1, k2, k3, k4 = jax.random.split(key, 4)
    bound1 = 1.0 / jnp.sqrt(jnp.float32(in_features))
    bound2 = 1.0 / jnp.sqrt(jnp.float32(hidden))
    w1 = jax.random.uniform(k1, (hidden, in_features), jnp.float32, -bound1, bound1)
    b1 = jax.random.uniform(k2, (hidden,), jnp.float32, -bound1, bound1)
    w2 = jax.random.uniform(k3, (out_features, hidden), jnp.float32, -bound2, bound2)
    b2 = jax.random.uniform(k4, (out_features,), jnp.float32, -bound2, bound2)
    return w1, b1, w2, b2


def _reference(x, w1, b1, w2, b2):
    return jnp.maximum(x @ w1.T + b1, 0.0) @ w2.T + b2


if __name__ == "__main__":
    # TODO(synk): the training loop (CrossEntropyLoss + SGD) and predict() accuracy from
    #             ANN_Class are not translated; this kernel implements the forward pass only.
    key = jax.random.PRNGKey(0)
    k_x, k_x2, k_p = jax.random.split(key, 3)

    w1, b1, w2, b2 = init_params(k_p)

    # Small iris-like batch: 8 samples x 4 features (single tile), pure f32 path.
    x_small = jax.random.uniform(k_x, (8, 4), jnp.float32, 0.0, 8.0)
    logits_small = ann_forward(x_small, w1, b1, w2, b2, use_bf16=False)
    jax.block_until_ready(logits_small)
    ref_small = _reference(x_small, w1, b1, w2, b2)
    assert logits_small.shape == (8, 3)
    assert jnp.allclose(logits_small, ref_small, atol=1e-5, rtol=1e-5)

    # Ragged batch exercising padding + a multi-step grid (small tile keeps the test light).
    x_big = jax.random.uniform(k_x2, (300, 4), jnp.float32, 0.0, 8.0)
    logits_big = ann_forward(x_big, w1, b1, w2, b2, block_b=128, use_bf16=False)
    jax.block_until_ready(logits_big)
    ref_big = _reference(x_big, w1, b1, w2, b2)
    assert logits_big.shape == (300, 3)
    assert jnp.allclose(logits_big, ref_big, atol=1e-4, rtol=1e-4)

    # Feature-major fast path with auto precision (bf16 multiplies on v6e/v7x, f32 on v5e).
    logits_fm = ann_forward_fm(x_big.T, w1, b1, w2, b2, block_b=128)
    jax.block_until_ready(logits_fm)
    assert logits_fm.shape == (3, 300)
    assert bool(jnp.all(jnp.isfinite(logits_fm)))
    assert jnp.allclose(logits_fm.T, ref_big, atol=0.5, rtol=0.05)

    print("KERNEL_OK")
</pallas_src>

<mosaic_0001>
module attributes {stable_mosaic.version = 11 : i64} {
  func.func @_mlp_kernel(%arg0: i32, %arg1: memref<4x128xf32, #tpu.memory_space<vmem>>, %arg2: memref<64x4xf32, #tpu.memory_space<vmem>>, %arg3: memref<64x1xf32, #tpu.memory_space<vmem>>, %arg4: memref<3x64xf32, #tpu.memory_space<vmem>>, %arg5: memref<3x1xf32, #tpu.memory_space<vmem>>, %arg6: memref<3x128xf32, #tpu.memory_space<vmem>>) attributes {dimension_semantics = [#tpu.dimension_semantics<parallel>], iteration_bounds = array<i64: 1>, scalar_prefetch = 0 : i64, scratch_operands = 0 : i64, tpu.core_type = #tpu.core_type<tc>, window_params = [{transform_indices = @transform_0, window_bounds = array<i64: 4, 128>}, {pipeline_mode = #tpu.pipeline_mode<synchronous>, transform_indices = @transform_1, window_bounds = array<i64: 64, 4>}, {pipeline_mode = #tpu.pipeline_mode<synchronous>, transform_indices = @transform_2, window_bounds = array<i64: 64, 1>}, {pipeline_mode = #tpu.pipeline_mode<synchronous>, transform_indices = @transform_3, window_bounds = array<i64: 3, 64>}, {pipeline_mode = #tpu.pipeline_mode<synchronous>, transform_indices = @transform_4, window_bounds = array<i64: 3, 1>}, {transform_indices = @transform_5, window_bounds = array<i64: 3, 128>}]} {
    %c0 = arith.constant 0 : index
    %c0_0 = arith.constant 0 : index
    %0 = vector.load %arg1[%c0, %c0_0] : memref<4x128xf32, #tpu.memory_space<vmem>>, vector<4x128xf32>
    %c0_1 = arith.constant 0 : index
    %c0_2 = arith.constant 0 : index
    %1 = vector.load %arg2[%c0_1, %c0_2] : memref<64x4xf32, #tpu.memory_space<vmem>>, vector<64x4xf32>
    %c0_3 = arith.constant 0 : index
    %c0_4 = arith.constant 0 : index
    %2 = vector.load %arg3[%c0_3, %c0_4] : memref<64x1xf32, #tpu.memory_space<vmem>>, vector<64x1xf32>
    %3 = vector.extract_strided_slice %1 {offsets = [0, 0], sizes = [64, 1], strides = [1, 1]} : vector<64x4xf32> to vector<64x1xf32>
    %4 = vector.extract_strided_slice %0 {offsets = [0, 0], sizes = [1, 128], strides = [1, 1]} : vector<4x128xf32> to vector<1x128xf32>
    %5 = vector.broadcast %3 : vector<64x1xf32> to vector<64x128xf32>
    %6 = vector.broadcast %4 : vector<1x128xf32> to vector<64x128xf32>
    %7 = arith.mulf %5, %6 : vector<64x128xf32>
    %8 = vector.broadcast %2 : vector<64x1xf32> to vector<64x128xf32>
    %9 = arith.addf %8, %7 : vector<64x128xf32>
    %10 = vector.extract_strided_slice %1 {offsets = [0, 1], sizes = [64, 1], strides = [1, 1]} : vector<64x4xf32> to vector<64x1xf32>
    %11 = vector.extract_strided_slice %0 {offsets = [1, 0], sizes = [1, 128], strides = [1, 1]} : vector<4x128xf32> to vector<1x128xf32>
    %12 = vector.broadcast %10 : vector<64x1xf32> to vector<64x128xf32>
    %13 = vector.broadcast %11 : vector<1x128xf32> to vector<64x128xf32>
    %14 = arith.mulf %12, %13 : vector<64x128xf32>
    %15 = arith.addf %9, %14 : vector<64x128xf32>
    %16 = vector.extract_strided_slice %1 {offsets = [0, 2], sizes = [64, 1], strides = [1, 1]} : vector<64x4xf32> to vector<64x1xf32>
    %17 = vector.extract_strided_slice %0 {offsets = [2, 0], sizes = [1, 128], strides = [1, 1]} : vector<4x128xf32> to vector<1x128xf32>
    %18 = vector.broadcast %16 : vector<64x1xf32> to vector<64x128xf32>
    %19 = vector.broadcast %17 : vector<1x128xf32> to vector<64x128xf32>
    %20 = arith.mulf %18, %19 : vector<64x128xf32>
    %21 = arith.addf %15, %20 : vector<64x128xf32>
    %22 = vector.extract_strided_slice %1 {offsets = [0, 3], sizes = [64, 1], strides = [1, 1]} : vector<64x4xf32> to vector<64x1xf32>
    %23 = vector.extract_strided_slice %0 {offsets = [3, 0], sizes = [1, 128], strides = [1, 1]} : vector<4x128xf32> to vector<1x128xf32>
    %24 = vector.broadcast %22 : vector<64x1xf32> to vector<64x128xf32>
    %25 = vector.broadcast %23 : vector<1x128xf32> to vector<64x128xf32>
    %26 = arith.mulf %24, %25 : vector<64x128xf32>
    %27 = arith.addf %21, %26 : vector<64x128xf32>
    %cst = arith.constant 0.000000e+00 : f32
    %28 = vector.broadcast %cst : f32 to vector<64x128xf32>
    %29 = arith.maximumf %27, %28 : vector<64x128xf32>
    %c0_5 = arith.constant 0 : index
    %c0_6 = arith.constant 0 : index
    %30 = vector.load %arg4[%c0_5, %c0_6] : memref<3x64xf32, #tpu.memory_space<vmem>>, vector<3x64xf32>
    %cst_7 = arith.constant dense<0.000000e+00> : vector<3x128xf32>
    %31 = tpu.matmul %30, %29, %cst_7 {dimension_numbers = #tpu.dot_dimension_numbers<[1], [0], [0], [1], [0, 0, 1, 1], [], []>} : vector<3x64xf32>, vector<64x128xf32>, vector<3x128xf32> -> vector<3x128xf32>
    %c0_8 = arith.constant 0 : index
    %c0_9 = arith.constant 0 : index
    %32 = vector.load %arg5[%c0_8, %c0_9] : memref<3x1xf32, #tpu.memory_space<vmem>>, vector<3x1xf32>
    %33 = vector.broadcast %32 : vector<3x1xf32> to vector<3x128xf32>
    %34 = arith.addf %31, %33 : vector<3x128xf32>
    %c0_10 = arith.constant 0 : index
    %c0_11 = arith.constant 0 : index
    %35 = vector.load %arg6[%c0_10, %c0_11] : memref<3x128xf32, #tpu.memory_space<vmem>>, vector<3x128xf32>
    tpu.vector_store %arg6[%c0_10, %c0_11], %34 {strides = array<i32>} : memref<3x128xf32, #tpu.memory_space<vmem>>, vector<3x128xf32>,
    return
  }
  func.func @transform_0(%arg0: i32) -> (i32, i32) {
    %c0_i32 = arith.constant 0 : i32
    %c0_i32_0 = arith.constant 0 : i32
    return %c0_i32, %arg0 : i32, i32
  }
  func.func @transform_1(%arg0: i32) -> (i32, i32) {
    %c0_i32 = arith.constant 0 : i32
    %c0_i32_0 = arith.constant 0 : i32
    %c0_i32_1 = arith.constant 0 : i32
    return %c0_i32, %c0_i32_0 : i32, i32
  }
  func.func @transform_2(%arg0: i32) -> (i32, i32) {
    %c0_i32 = arith.constant 0 : i32
    %c0_i32_0 = arith.constant 0 : i32
    %c0_i32_1 = arith.constant 0 : i32
    return %c0_i32, %c0_i32_0 : i32, i32
  }
  func.func @transform_3(%arg0: i32) -> (i32, i32) {
    %c0_i32 = arith.constant 0 : i32
    %c0_i32_0 = arith.constant 0 : i32
    %c0_i32_1 = arith.constant 0 : i32
    return %c0_i32, %c0_i32_0 : i32, i32
  }
  func.func @transform_4(%arg0: i32) -> (i32, i32) {
    %c0_i32 = arith.constant 0 : i32
    %c0_i32_0 = arith.constant 0 : i32
    %c0_i32_1 = arith.constant 0 : i32
    return %c0_i32, %c0_i32_0 : i32, i32
  }
  func.func @transform_5(%arg0: i32) -> (i32, i32) {
    %c0_i32 = arith.constant 0 : i32
    %c0_i32_0 = arith.constant 0 : i32
    return %c0_i32, %arg0 : i32, i32
  }
}

</mosaic_0001>

<bundles_post_ra>
// kernel: tpu_custom_call.1
= control target key start
LH: loop header
LB: loop body
LE: loop exit
PB: predicated region body
PF: predicated region fallthrough
CT: control target
= control target key end

     0   :  { %v495_v2 = vmov 2   ;;  %v496_v3 = vmov 0   ;;  %s669_s0 = inlined_call_operand.vmem [shape: f32[4,128], index: 0, kind: input, shape index: {}]   ;;  %s670_s1 = inlined_call_operand.vmem [shape: f32[64,4], index: 1, kind: input, shape index: {}]   ;;  %s671_s2 = inlined_call_operand.vmem [shape: f32[64,1], index: 2, kind: input, shape index: {}]   ;;  %s672_s3 = inlined_call_operand.vmem [shape: f32[3,64], index: 3, kind: input, shape index: {}]   ;;  %s673_s4 = inlined_call_operand.vmem [shape: f32[3,1], index: 4, kind: input, shape index: {}]   ;;  %s674_s5 = inlined_call_operand.hbm [shape: f32[3,128], index: 5, kind: output, shape index: {}]  }
   0x1   :  { %v30_v0 = vld [vmem:[%s671_s2] sm:$0xff]  ;;  %v24_v1 = vld [vmem:[%s670_s1 + $0x10] sm:$0xff]  ;;  %455 = vset.pattern.permute.xlu0 %v495_v2  ;;  %447 = vset.pattern.permute.xlu1 %v496_v3  ;;  %v31_v4 = vld [vmem:[%s671_s2 + $0x8] sm:$0xff] }
   0x2   :  { %92 = vperm.xlu1 %447, %v30_v0   ;;  %199 = vperm.xlu0 %455, %v24_v1   ;;  %v22_v5 = vld [vmem:[%s670_s1] sm:$0xff] }
   0x3   :  { %10 = vsyncpa [#allocation3], 0  ;;  %v23_v6 = vld [vmem:[%s670_s1 + $0x8] sm:$0xff]  ;;  %v497_v7 = vmov 1   ;;  %v25_v8 = vld [vmem:[%s670_s1 + $0x18] sm:$0xff]  ;;  %v498_v14 = vmov 3   ;;  %v78_v32 = vlaneseq }
   0x4   :  { %v32_v9 = vld [vmem:[%s671_s2 + $0x10] sm:$0xff]  ;;  %v35_v10 = vld [vmem:[%s671_s2 + $0x28] sm:$0xff]  ;;  %v29_v11 = vld [vmem:[%s670_s1 + $0x38] sm:$0xff]  ;;  %v499_v19 = vmov 0.0|0.0   ;;  %vm500_vm0 = vmmov 0   ;;  %v501_v21 = vmov 0.0  }
   0x5   :  { %v33_v12 = vld [vmem:[%s671_s2 + $0x18] sm:$0xff]  ;;  %v36_v13 = vld [vmem:[%s671_s2 + $0x30] sm:$0xff]  ;;  %v26_v16 = vld [vmem:[%s670_s1 + $0x20] sm:$0xff]  ;;  %427 = vmatprep.subr.bf16.mxu0 %v499_v19  ;;  %424 = vmatprep.mubr.msk.f32.mxu0 %vm500_vm0, %v501_v21  ;;  %v79_v35 = vshrl.u32 %v78_v32, 7  ;;  %vm309_vm1 = vcmask 523264   ;;  %s502_s27 = smov [#allocation2]  }
   0x6   :  { %97 = vperm.xlu1 %447, %v31_v4   ;;  %456 = vset.pattern.permute.xlu0 %v496_v3  ;;  %v28_v15 = vld [vmem:[%s670_s1 + $0x30] sm:$0xff]  ;;  %v27_v17 = vld [vmem:[%s670_s1 + $0x28] sm:$0xff]  ;;  %v34_v18 = vld [vmem:[%s671_s2 + $0x20] sm:$0xff]  ;;  %s390_s28 = sshll.u32 %s502_s27, 4  ;;  %s391_s28 = int_to_ptr.vmem [resolvable:$true] %s390_s28 }
   0x7   :  { %40 = vperm.xlu0 %456, %v22_v5   ;;  %v37_v20 = vld [vmem:[%s671_s2 + $0x38] sm:$0xff]  ;;  %v303_v22 = vld [vmem:[%s673_s4] sm:$0x7]  ;;  %v80_v38 = vsub.s32 0, %v79_v35  ;;  %v172_v43 = vsub.s32 1, %v79_v35  ;;  %v224_v45 = vsub.s32 2, %v79_v35  ;;  %p476_p1 = scmp.lt.s32.totalorder %s391_s28, %s391_s28 }
   0x8   :  { %v21_v39 = vld [vmem:[%s669_s0] sm:$0xf]  ;;  %v276_v50 = vsub.s32 3, %v79_v35  ;;  %s471_s29 = scalar_lea.vmem %s391_s28, 64 }
   0x9   :  { %v608_v42 = vrot.slane %v21_v39, %v80_v38  ;;  %v611_v47 = vrot.slane %v21_v39, %v172_v43  ;;  %v614_v51 = vrot.slane %v21_v39, %v224_v45  ;;  %p472_p0 = scmp.ne.s32.totalorder %s391_s28, %s471_s29  ;;  %p477_p2 = scmp.lt.s32.totalorder %s471_s29, %s471_s29 }
   0xa   :  { %448 = vset.pattern.permute.xlu1 %v497_v7  ;;  %v617_v57 = vrot.slane %v21_v39, %v276_v50 }
   0xb   :  { %143 = vperm.xlu1 %448, %v23_v6   ;;  %45 = vperm.xlu0 %456, %v23_v6   ;;  %p478_p3 = por %p477_p2, %p476_p1 }
   0xd   :  { %p479_p4 = pnand %p478_p3, %p472_p0 }
   0xf   :  { %449 = vset.pattern.permute.xlu1 %v496_v3  ;;  %55 = vperm.xlu0 %456, %v25_v8  }
  0x10   :  { %50 = vperm.xlu1 %449, %v24_v1  }
  0x13   :  { %102 = vperm.xlu0 %456, %v32_v9  }
  0x14   :  { %450 = vset.pattern.permute.xlu1 %v495_v2 }
  0x15   :  { %191 = vperm.xlu1 %450, %v22_v5  }
  0x17   :  { %117 = vperm.xlu0 %456, %v35_v10  }
  0x19   :  { %195 = vperm.xlu1 %450, %v23_v6  }
  0x1b   :  { %75 = vperm.xlu0 %456, %v29_v11  }
  0x1d   :  { %451 = vset.pattern.permute.xlu1 %v496_v3 }
  0x1e   :  { %107 = vperm.xlu1 %451, %v33_v12  }
  0x1f   :  { %122 = vperm.xlu0 %456, %v36_v13  }
  0x22   :  { %452 = vset.pattern.permute.xlu1 %v497_v7 }
  0x23   :  { %463 = vset.pattern.permute.xlu0 %v497_v7  ;;  %151 = vperm.xlu1 %452, %v25_v8  }
  0x24   :  { %139 = vperm.xlu0 %463, %v22_v5  }
  0x27   :  { %453 = vset.pattern.permute.xlu1 %v498_v14 }
  0x28   :  { %147 = vperm.xlu0 %463, %v24_v1   ;;  %243 = vperm.xlu1 %453, %v22_v5  }
  0x2c   :  { %163 = vperm.xlu0 %463, %v28_v15   ;;  %454 = vset.pattern.permute.xlu1 %v496_v3 }
  0x2d   :  { %60 = vperm.xlu1 %454, %v26_v16  }
  0x30   :  { %465 = vset.pattern.permute.xlu0 %v498_v14 }
  0x31   :  { %247 = vperm.xlu0 %465, %v23_v6   ;;  %65 = vperm.xlu1 %454, %v27_v17  }
  0x35   :  { %251 = vperm.xlu0 %465, %v24_v1   ;;  %457 = vset.pattern.permute.xlu1 %v495_v2 }
  0x36   :  { %203 = vperm.xlu1 %457, %v25_v8  }
  0x39   :  { %263 = vperm.xlu0 %465, %v27_v17  }
  0x3a   :  { %458 = vset.pattern.permute.xlu1 %v496_v3 }
  0x3b   :  { %112 = vperm.xlu1 %458, %v34_v18  }
  0x3d   :  { %267 = vperm.xlu0 %465, %v28_v15  }
  0x3f   :  { %459 = vset.pattern.permute.xlu1 %v497_v7 }
  0x40   :  { %155 = vperm.xlu1 %459, %v26_v16  }
  0x41   :  { %470 = vset.pattern.permute.xlu0 %v496_v3 }
  0x42   :  { %306 = vperm.xlu0 %470, %v303_v22  }
  0x44   :  { %159 = vperm.xlu1 %459, %v27_v17  }
  0x48   :  { %460 = vset.pattern.permute.xlu1 %v498_v14 }
  0x49   :  { %255 = vperm.xlu1 %460, %v25_v8  }
  0x4d   :  { %461 = vset.pattern.permute.xlu1 %v496_v3 }
  0x4e   :  { %70 = vperm.xlu1 %461, %v28_v15  }
  0x52   :  { %462 = vset.pattern.permute.xlu1 %v495_v2 }
  0x53   :  { %207 = vperm.xlu1 %462, %v26_v16  }
  0x57   :  { %211 = vperm.xlu1 %462, %v27_v17  }
  0x5b   :  { %464 = vset.pattern.permute.xlu1 %v496_v3 }
  0x5c   :  { %127 = vperm.xlu1 %464, %v37_v20  }
  0x60   :  { %466 = vset.pattern.permute.xlu1 %v497_v7 }
  0x61   :  { %167 = vperm.xlu1 %466, %v29_v11  }
  0x65   :  { %467 = vset.pattern.permute.xlu1 %v498_v14 }
  0x66   :  { %259 = vperm.xlu1 %467, %v26_v16  }
  0x6a   :  { %468 = vset.pattern.permute.xlu1 %v495_v2 }
  0x6b   :  { %215 = vperm.xlu1 %468, %v28_v15  }
  0x6f   :  { %219 = vperm.xlu1 %468, %v29_v11  }
  0x73   :  { %469 = vset.pattern.permute.xlu1 %v498_v14 }
  0x74   :  { %271 = vperm.xlu1 %469, %v29_v11  }
  0x81   :  { %v93_v23 = vpop.permute.xlu1 %92  ;;  %v200_v24 = vpop.permute.xlu0 %199 }
  0x82   :  { %v228_v21 = vmul.f32 %v614_v51, %v200_v24 }
  0x85   :  { %v98_v25 = vpop.permute.xlu1 %97 }
  0x86   :  { %v41_v26 = vpop.permute.xlu0 %40 }
  0x87   :  { %v82_v46 = vmul.f32 %v608_v42, %v41_v26 }
  0x89   :  { %v130_v52 = vadd.f32 %v93_v23, %v82_v46 }
  0x8a   :  { %v144_v27 = vpop.permute.xlu1 %143  ;;  %v46_v28 = vpop.permute.xlu0 %45 }
  0x8b   :  { %v83_v53 = vmul.f32 %v608_v42, %v46_v28  ;;  %v175_v62 = vmul.f32 %v611_v47, %v144_v27 }
  0x8d   :  { %v131_v58 = vadd.f32 %v98_v25, %v83_v53 }
  0x8e   :  { %v56_v29 = vpop.permute.xlu0 %55 }
  0x8f   :  { %v51_v30 = vpop.permute.xlu1 %50  ;;  %v183_v2 = vadd.f32 %v175_v62, %v131_v58  ;;  %v85_v17 = vmul.f32 %v608_v42, %v56_v29 }
  0x90   :  { %v84_v14 = vmul.f32 %v608_v42, %v51_v30 }
  0x92   :  { %v103_v31 = vpop.permute.xlu0 %102 }
  0x93   :  { %v132_v18 = vadd.f32 %v103_v31, %v84_v14 }
  0x94   :  { %v192_v33 = vpop.permute.xlu1 %191 }
  0x95   :  { %v226_v59 = vmul.f32 %v614_v51, %v192_v33 }
  0x96   :  { %v599_v34 = vpop.permute.xlu0 %117 }
  0x98   :  { %v196_v36 = vpop.permute.xlu1 %195 }
  0x99   :  { %v227_v63 = vmul.f32 %v614_v51, %v196_v36 }
  0x9a   :  { %v601_v37 = vpop.permute.xlu0 %75 }
  0x9b   :  { %v235_v5 = vadd.f32 %v227_v63, %v183_v2 }
  0x9d   :  { %v108_v40 = vpop.permute.xlu1 %107 }
  0x9e   :  { %v606_v41 = vpop.permute.xlu0 %122  ;;  %v133_v26 = vadd.f32 %v108_v40, %v85_v17 }
  0xa2   :  { %v152_v44 = vpop.permute.xlu1 %151 }
  0xa3   :  { %v140_v48 = vpop.permute.xlu0 %139  ;;  %v177_v22 = vmul.f32 %v611_v47, %v152_v44 }
  0xa4   :  { %v174_v49 = vmul.f32 %v611_v47, %v140_v48 }
  0xa5   :  { %v185_v32 = vadd.f32 %v177_v22, %v133_v26 }
  0xa6   :  { %v182_v56 = vadd.f32 %v174_v49, %v130_v52 }
  0xa7   :  { %v148_v54 = vpop.permute.xlu0 %147  ;;  %v244_v55 = vpop.permute.xlu1 %243 }
  0xa8   :  { %v234_v0 = vadd.f32 %v226_v59, %v182_v56  ;;  %v278_v1 = vmul.f32 %v617_v57, %v244_v55  ;;  %v176_v15 = vmul.f32 %v611_v47, %v148_v54 }
  0xaa   :  { %v286_v6 = vadd.f32 %v278_v1, %v234_v0  ;;  %v184_v23 = vadd.f32 %v176_v15, %v132_v18 }
  0xab   :  { %v164_v60 = vpop.permute.xlu0 %163 }
  0xac   :  { %v61_v61 = vpop.permute.xlu1 %60  ;;  %v294_v9 = vmax.f32 %v286_v6, 0.0  ;;  %v236_v30 = vadd.f32 %v228_v21, %v184_v23  ;;  %v180_v43 = vmul.f32 %v611_v47, %v164_v60 }
  0xad   :  { %v86_v58 = vmul.f32 %v608_v42, %v61_v61 }
  0xb0   :  { %v248_v3 = vpop.permute.xlu0 %247  ;;  %v66_v4 = vpop.permute.xlu1 %65 }
  0xb1   :  { %v279_v7 = vmul.f32 %v617_v57, %v248_v3  ;;  %v87_v50 = vmul.f32 %v608_v42, %v66_v4 }
  0xb3   :  { %v287_v8 = vadd.f32 %v279_v7, %v235_v5  ;;  %v135_v54 = vadd.f32 %v599_v34, %v87_v50 }
  0xb4   :  { %v252_v20 = vpop.permute.xlu0 %251 }
  0xb5   :  { %v295_v10 = vmax.f32 %v287_v8, 0.0  ;;  %v204_v11 = vpop.permute.xlu1 %203  ;;  %v280_v27 = vmul.f32 %v617_v57, %v252_v20 }
  0xb6   :  { %v229_v28 = vmul.f32 %v614_v51, %v204_v11  ;;  %v89_v11 = vmul.f32 %v608_v42, %v601_v37 }
  0xb7   :  { %v428_v12 = vpack.c.bf16 %v295_v10, %v294_v9  ;;  %v288_v35 = vadd.f32 %v280_v27, %v236_v30 }
  0xb8   :  { %v237_v36 = vadd.f32 %v229_v28, %v185_v32  ;;  %v264_v56 = vpop.permute.xlu0 %263 }
  0xb9   :  { %429 = vmatpush3.bf16.msra.mxu0 %v428_v12  ;;  %v296_v38 = vmax.f32 %v288_v35, 0.0  ;;  %v283_v1 = vmul.f32 %v617_v57, %v264_v56 }
  0xba   :  { %v113_v13 = vpop.permute.xlu1 %112  ;;  %430 = vmatprep.subr.bf16.mxu0 %v499_v19 }
  0xbb   :  { %v134_v62 = vadd.f32 %v113_v13, %v86_v58 }
  0xbc   :  { %v268_v14 = vpop.permute.xlu0 %267 }
  0xbd   :  { %v284_v20 = vmul.f32 %v617_v57, %v268_v14 }
  0xbf   :  { %v156_v16 = vpop.permute.xlu1 %155 }
  0xc3   :  { %v160_v25 = vpop.permute.xlu1 %159 }
  0xc4   :  { %v179_v53 = vmul.f32 %v611_v47, %v160_v25 }
  0xc6   :  { %v187_v59 = vadd.f32 %v179_v53, %v135_v54 }
  0xc8   :  { %v256_v33 = vpop.permute.xlu1 %255 }
  0xc9   :  { %v281_v29 = vmul.f32 %v617_v57, %v256_v33 }
  0xcb   :  { %v289_v31 = vadd.f32 %v281_v29, %v237_v36 }
  0xcd   :  { %v297_v39 = vmax.f32 %v289_v31, 0.0  ;;  %v71_v24 = vpop.permute.xlu1 %70 }
  0xce   :  { %v88_v44 = vmul.f32 %v608_v42, %v71_v24 }
  0xcf   :  { %v431_v40 = vpack.c.bf16 %v297_v39, %v296_v38 }
  0xd0   :  { %v136_v45 = vadd.f32 %v606_v41, %v88_v44  ;;  %v178_v41 = vmul.f32 %v611_v47, %v156_v16 }
  0xd1   :  { %432 = vmatpush3.bf16.msra.mxu0 %v431_v40 }
  0xd2   :  { %v208_v46 = vpop.permute.xlu1 %207  ;;  %v188_v48 = vadd.f32 %v180_v43, %v136_v45  ;;  %433 = vmatprep.subr.bf16.mxu0 %v499_v19  ;;  %v186_v2 = vadd.f32 %v178_v41, %v134_v62 }
  0xd3   :  { %v230_v63 = vmul.f32 %v614_v51, %v208_v46 }
  0xd5   :  { %v238_v4 = vadd.f32 %v230_v63, %v186_v2 }
  0xd6   :  { %v212_v49 = vpop.permute.xlu1 %211 }
  0xd7   :  { %v231_v55 = vmul.f32 %v614_v51, %v212_v49 }
  0xd9   :  { %v239_v0 = vadd.f32 %v231_v55, %v187_v59 }
  0xdb   :  { %v128_v52 = vpop.permute.xlu1 %127  ;;  %v291_v5 = vadd.f32 %v283_v1, %v239_v0 }
  0xdc   :  { %v137_v15 = vadd.f32 %v128_v52, %v89_v11 }
  0xdd   :  { %v299_v7 = vmax.f32 %v291_v5, 0.0 }
  0xe0   :  { %v168_v60 = vpop.permute.xlu1 %167 }
  0xe1   :  { %v181_v12 = vmul.f32 %v611_v47, %v168_v60 }
  0xe3   :  { %v189_v18 = vadd.f32 %v181_v12, %v137_v15 }
  0xe5   :  { %v260_v3 = vpop.permute.xlu1 %259 }
  0xe6   :  { %v282_v34 = vmul.f32 %v617_v57, %v260_v3 }
  0xe8   :  { %v290_v6 = vadd.f32 %v282_v34, %v238_v4 }
  0xea   :  { %v298_v8 = vmax.f32 %v290_v6, 0.0  ;;  %v216_v61 = vpop.permute.xlu1 %215 }
  0xeb   :  { %v232_v9 = vmul.f32 %v614_v51, %v216_v61 }
  0xec   :  { %v434_v10 = vpack.c.bf16 %v299_v7, %v298_v8 }
  0xed   :  { %v240_v16 = vadd.f32 %v232_v9, %v188_v48 }
  0xee   :  { %v220_v13 = vpop.permute.xlu1 %219  ;;  %435 = vmatpush3.bf16.msra.mxu0 %v434_v10 }
  0xef   :  { %436 = vmatprep.subr.bf16.mxu0 %v499_v19  ;;  %v233_v17 = vmul.f32 %v614_v51, %v220_v13  ;;  %v292_v22 = vadd.f32 %v284_v20, %v240_v16  ;;  %v302_v19 = vld [vmem:[%s672_s3] sm:$0x7]  ;;  %v307_v51 = vpop.permute.xlu0 %306 }
  0xf1   :  { %v241_v23 = vadd.f32 %v233_v17, %v189_v18  ;;  %v300_v42 = vmax.f32 %v292_v22, 0.0 }
  0xf3   :  { %v272_v21 = vpop.permute.xlu1 %271 }
  0xf4   :  { %v285_v25 = vmul.f32 %v617_v57, %v272_v21 }
  0xf6   :  { %v293_v37 = vadd.f32 %v285_v25, %v241_v23 }
  0xf8   :  { %v301_v47 = vmax.f32 %v293_v37, 0.0 }
  0xfa   :  { %v437_v26 = vpack.c.bf16 %v301_v47, %v300_v42 }
  0xfc   :  { %438 = vmatpush3.bf16.msra.mxu0 %v437_v26 }
  0xff   :  { %425 = vmatmul.mubr.msk.f32.vlgmr.msra.gmra.mrb[0].mxu0 %vm309_vm1, %v302_v19 }
 0x1d2   :  { %v379_v27 = vpop.f32.mrb[0].mxu0 }
 0x1d3   :  { %v380_v28 = vadd.f32 %v379_v27, %v307_v51  ;;  %v426_v32 = vpop.f32.mrb[1].mxu0 }
 0x1d5   :  { %383 = vst [vmem:[#allocation2] sm:$0x7] %v380_v28 }
 0x1d6   :  { %482 = shalt.err (!%p479_p4)
}
 0x1d7   :  { %s483_s3 = scalar_lea.hbm %s674_s5, 64 }
 0x1d8   :  { %p484_p5 = scmp.ne.s32.totalorder %s674_s5, %s483_s3  ;;  %p487_p6 = scmp.lt.u32.totalorder %s483_s3, %s674_s5 }
 0x1da   :  { %p489_p7 = pnand %p487_p6, %p484_p5 }
 0x1dc   :  { %492 = shalt.err (!%p489_p7)
}
 0x1dd   :  { %393 = dma.vmem_to_hbm [thread:$0]  %s391_s28, 64, %s674_s5, [#allocation3]  }
 0x1de   :  { %493 = dma.done.wait [#allocation3], 64  }
 0x1df   :  { %494 = vsyncadd [#allocation3], 4294967232 }
 0x1e0   :  { %397 = vsyncpa [#allocation3], 1 }

</bundles_post_ra>
